<compile_context>
chip_gen: v7x
topology: tpu7x:2x2x1
jax: 0.10.0
libtpu: 0.0.40
codegen_flags: <defaults>
</compile_context>

<pallas_src>
import math

import jax
import jax.numpy as jnp
from jax.experimental import pallas as pl
from jax.experimental.pallas import tpu as pltpu


# ----------------------------- kernels -----------------------------

def _gcn_proj_first_single(x_ref, wt_ref, a_ref, o_ref):
    # one k step: out = A @ (X @ W.T), no accumulator needed
    h = jnp.dot(x_ref[0], wt_ref[...], preferred_element_type=jnp.float32)
    o_ref[0] = jnp.dot(a_ref[0], h.astype(x_ref.dtype),
                       preferred_element_type=jnp.float32).astype(o_ref.dtype)


def _gcn_bmm_first_single(x_ref, wt_ref, a_ref, o_ref):
    # one k step: out = (A @ X) @ W.T
    ax = jnp.dot(a_ref[0], x_ref[0], preferred_element_type=jnp.float32)
    o_ref[0] = jnp.dot(ax.astype(wt_ref.dtype), wt_ref[...],
                       preferred_element_type=jnp.float32).astype(o_ref.dtype)


def _gcn_proj_first_acc(x_ref, wt_ref, a_ref, o_ref, acc_ref):
    # acc_ref: (TM, Dp) f32; h recomputed per row tile (cheap when N >> Din)
    k = pl.program_id(2)

    @pl.when(k == 0)
    def _():
        acc_ref[...] = jnp.zeros_like(acc_ref)

    h = jnp.dot(x_ref[0], wt_ref[...], preferred_element_type=jnp.float32)
    acc_ref[...] += jnp.dot(a_ref[0], h.astype(x_ref.dtype),
                            preferred_element_type=jnp.float32)

    @pl.when(k == pl.num_programs(2) - 1)
    def _():
        o_ref[0] = acc_ref[...].astype(o_ref.dtype)


def _gcn_bmm_first_acc(x_ref, wt_ref, a_ref, o_ref, acc_ref):
    # acc_ref: (TM, Din) f32; single projection GEMM at the last k step
    k = pl.program_id(2)

    @pl.when(k == 0)
    def _():
        acc_ref[...] = jnp.zeros_like(acc_ref)

    acc_ref[...] += jnp.dot(a_ref[0], x_ref[0], preferred_element_type=jnp.float32)

    @pl.when(k == pl.num_programs(2) - 1)
    def _():
        o_ref[0] = jnp.dot(acc_ref[...].astype(wt_ref.dtype), wt_ref[...],
                           preferred_element_type=jnp.float32).astype(o_ref.dtype)


# ----------------------------- wrapper -----------------------------

def _round_up(x, m):
    return (x + m - 1) // m * m


def _pad_to(x, shape):
    pads = [(0, t - s) for s, t in zip(x.shape, shape)]
    if any(p for _, p in pads):
        return jnp.pad(x, pads)
    return x


def _vmem_cap_bytes():
    # Generation-aware cap: leave ~16 MiB headroom for internal scratch.
    # v7x (64 MiB/TC) -> ~48 MiB; v5e/v6e (128 MiB) -> 96 MiB.
    try:
        phys = int(pltpu.get_tpu_info().vmem_capacity_bytes)
    except Exception:
        phys = 64 << 20          # conservative default (v7x per-TensorCore VMEM)
    return max(min(phys - (16 << 20), 96 << 20), 32 << 20)


def graph_convolution(X, A, W, *, compute_dtype=None, tile_m=None, tile_k=None):
    """out = bmm(A, X @ W.T);  X: (B,N,Din), A: (B,N,N), W: (Dout,Din) (nn.Linear)."""
    B, N, Din = X.shape
    Dout = W.shape[0]
    out_dtype = X.dtype

    if compute_dtype is not None:       # optional bf16 streaming (keeps f32 accumulator)
        X = X.astype(compute_dtype)
        A = A.astype(compute_dtype)
        W = W.astype(compute_dtype)
    in_dtype = X.dtype
    itemsize = jnp.dtype(in_dtype).itemsize
    sub = {4: 8, 2: 16, 1: 32}.get(itemsize, 8)   # dtype-aware min sublane tile

    project_first = Dout <= Din          # run the O(N^2) bmm over min(Din, Dout)
    Dp = _round_up(Dout, 128)            # lane-dense output / weight lanes
    # TODO(synk): for very large Din*Dout, tile the Dp axis of W instead of keeping
    # the full (Din, Dp) weight resident in VMEM.

    if tile_m is not None and tile_k is not None:
        TM, TK = tile_m, tile_k
        Np = _round_up(N, math.lcm(TM, TK))
    elif N <= 512:
        Np = _round_up(N, sub)           # one fused step per batch element
        TM = TK = Np
    else:
        TM, TK = 512, 256                # large row tile cuts per-step overhead / re-reads
        Np = _round_up(N, math.lcm(TM, TK))

    grid_m = Np // TM
    grid_k = Np // TK

    # zero padding is mathematically neutral; padding is sliced off at the end
    Xp = _pad_to(X, (B, Np, Din))
    Ap = _pad_to(A, (B, Np, Np))
    Wt = _pad_to(W.T, (Din, Dp))         # pre-transposed, MXU-native RHS layout

    if grid_k == 1:
        kernel = _gcn_proj_first_single if project_first else _gcn_bmm_first_single
        scratch = []
        a_spec = pl.BlockSpec((1, TM, TK), lambda b, j, k: (b, j, k))
        a_bufs = 2
    else:
        kernel = _gcn_proj_first_acc if project_first else _gcn_bmm_first_acc
        scratch = [pltpu.VMEM((TM, Dp if project_first else Din), jnp.float32)]
        a_spec = pl.BlockSpec((1, TM, TK), lambda b, j, k: (b, j, k),
                              pipeline_mode=pl.Buffered(3))
        a_bufs = 3

    vmem_est = (a_bufs * TM * TK * itemsize            # streamed adjacency tiles
                + 2 * TK * Din * itemsize              # streamed X tiles
                + Din * Dp * itemsize                  # resident transposed weight
                + 2 * TM * Dp * itemsize               # double-buffered output tile
                + TM * (Dp if project_first else Din) * 4)   # f32 accumulator
    vmem_limit = int(min(max(2 * vmem_est, 16 << 20), _vmem_cap_bytes()))

    if project_first:
        flops = 2 * B * Np * Np * Dp + 2 * B * grid_m * Np * Din * Dp
    else:
        flops = 2 * B * Np * Np * Din + 2 * B * Np * Din * Dp
    bytes_accessed = (grid_m * B * Np * Din + B * Np * Np
                      + Din * Dp + B * Np * Dp) * itemsize

    out_p = pl.pallas_call(
        kernel,
        out_shape=jax.ShapeDtypeStruct((B, Np, Dp), out_dtype),
        grid=(B, grid_m, grid_k),
        in_specs=[
            pl.BlockSpec((1, TK, Din), lambda b, j, k: (b, k, 0)),   # X k-tile
            pl.BlockSpec((Din, Dp), lambda b, j, k: (0, 0)),         # resident W.T
            a_spec,                                                  # A (j, k) tile
        ],
        out_specs=pl.BlockSpec((1, TM, Dp), lambda b, j, k: (b, j, 0)),
        scratch_shapes=scratch,
        compiler_params=pltpu.CompilerParams(
            dimension_semantics=("parallel", "parallel", "arbitrary"),
            vmem_limit_bytes=vmem_limit,
        ),
        cost_estimate=pl.CostEstimate(flops=flops, transcendentals=0,
                                      bytes_accessed=bytes_accessed),
    )(Xp, Wt, Ap)

    if Np != N or Dp != Dout:
        out_p = out_p[:, :N, :Dout]
    return out_p


# ----------------------------- test harness -----------------------------

def xavier_uniform(key, out_dim, in_dim, dtype=jnp.float32):
    # torch.nn.init.xavier_uniform_ on an (out_dim, in_dim) nn.Linear weight
    bound = math.sqrt(6.0 / (in_dim + out_dim))
    return jax.random.uniform(key, (out_dim, in_dim), dtype, -bound, bound)


def _reference(X, A, W):
    return jnp.einsum("bnm,bmd->bnd", A, X @ W.T)


def _check(key, B, N, Din, Dout, **kwargs):
    kx, ka, kw = jax.random.split(key, 3)
    X = jax.random.normal(kx, (B, N, Din), jnp.float32)
    A = jax.random.uniform(ka, (B, N, N), jnp.float32)   # dense "adjacency"
    W = xavier_uniform(kw, Dout, Din)
    out = jax.block_until_ready(graph_convolution(X, A, W, **kwargs))
    ref = _reference(X, A, W)
    assert out.shape == (B, N, Dout), out.shape
    assert jnp.allclose(out, ref, atol=1e-3, rtol=1e-3), \
        float(jnp.max(jnp.abs(out - ref)))


if __name__ == "__main__":
    key = jax.random.PRNGKey(0)
    k1, k2, k3, k4 = jax.random.split(key, 4)

    # Dout > Din -> bmm-first fused order (single k step, no scratch)
    _check(k1, B=2, N=8, Din=16, Dout=32)
    # Dout < Din -> project-first fused order (single k step, no scratch)
    _check(k2, B=2, N=8, Din=32, Dout=16)
    # Tiled reduction path (f32 accumulator + Buffered(3)), both orders
    _check(k3, B=2, N=256, Din=16, Dout=32, tile_m=128, tile_k=128)
    _check(k4, B=2, N=256, Din=32, Dout=16, tile_m=128, tile_k=128)

    print("KERNEL_OK")
</pallas_src>

<mosaic_0001>
module attributes {stable_mosaic.version = 11 : i64} {
  func.func @_gcn_bmm_first_single(%arg0: i32, %arg1: i32, %arg2: i32, %arg3: memref<1x8x16xf32, #tpu.memory_space<vmem>>, %arg4: memref<16x128xf32, #tpu.memory_space<vmem>>, %arg5: memref<1x8x8xf32, #tpu.memory_space<vmem>>, %arg6: memref<1x8x128xf32, #tpu.memory_space<vmem>>) attributes {dimension_semantics = [#tpu.dimension_semantics<parallel>, #tpu.dimension_semantics<parallel>, #tpu.dimension_semantics<arbitrary>], iteration_bounds = array<i64: 2, 1, 1>, scalar_prefetch = 0 : i64, scratch_operands = 0 : i64, tpu.core_type = #tpu.core_type<tc>, window_params = [{transform_indices = @transform_0, window_bounds = array<i64: 1, 8, 16>}, {pipeline_mode = #tpu.pipeline_mode<synchronous>, transform_indices = @transform_1, window_bounds = array<i64: 16, 128>}, {transform_indices = @transform_2, window_bounds = array<i64: 1, 8, 8>}, {transform_indices = @transform_3, window_bounds = array<i64: 1, 8, 128>}]} {
    %c0 = arith.constant 0 : index
    %c0_0 = arith.constant 0 : index
    %c0_1 = arith.constant 0 : index
    %0 = vector.load %arg5[%c0, %c0_0, %c0_1] : memref<1x8x8xf32, #tpu.memory_space<vmem>>, vector<1x8x8xf32>
    %1 = vector.shape_cast %0 : vector<1x8x8xf32> to vector<8x8xf32>
    %c0_2 = arith.constant 0 : index
    %c0_3 = arith.constant 0 : index
    %c0_4 = arith.constant 0 : index
    %2 = vector.load %arg3[%c0_2, %c0_3, %c0_4] : memref<1x8x16xf32, #tpu.memory_space<vmem>>, vector<1x8x16xf32>
    %3 = vector.shape_cast %2 : vector<1x8x16xf32> to vector<8x16xf32>
    %cst = arith.constant dense<0.000000e+00> : vector<8x16xf32>
    %4 = tpu.matmul %1, %3, %cst {dimension_numbers = #tpu.dot_dimension_numbers<[1], [0], [0], [1], [0, 0, 1, 1], [], []>} : vector<8x8xf32>, vector<8x16xf32>, vector<8x16xf32> -> vector<8x16xf32>
    %c0_5 = arith.constant 0 : index
    %c0_6 = arith.constant 0 : index
    %5 = vector.load %arg4[%c0_5, %c0_6] : memref<16x128xf32, #tpu.memory_space<vmem>>, vector<16x128xf32>
    %cst_7 = arith.constant dense<0.000000e+00> : vector<8x128xf32>
    %6 = tpu.matmul %4, %5, %cst_7 {dimension_numbers = #tpu.dot_dimension_numbers<[1], [0], [0], [1], [0, 0, 1, 1], [], []>} : vector<8x16xf32>, vector<16x128xf32>, vector<8x128xf32> -> vector<8x128xf32>
    %c0_8 = arith.constant 0 : index
    %c0_9 = arith.constant 0 : index
    %c0_10 = arith.constant 0 : index
    %7 = vector.load %arg6[%c0_8, %c0_9, %c0_10] : memref<1x8x128xf32, #tpu.memory_space<vmem>>, vector<1x8x128xf32>
    %8 = vector.shape_cast %7 : vector<1x8x128xf32> to vector<8x128xf32>
    %9 = vector.shape_cast %6 : vector<8x128xf32> to vector<1x8x128xf32>
    tpu.vector_store %arg6[%c0_8, %c0_9, %c0_10], %9 {strides = array<i32>} : memref<1x8x128xf32, #tpu.memory_space<vmem>>, vector<1x8x128xf32>,
    return
  }
  func.func @transform_0(%arg0: i32, %arg1: i32, %arg2: i32) -> (i32, i32, i32) {
    %c0_i32 = arith.constant 0 : i32
    %c0_i32_0 = arith.constant 0 : i32
    return %arg0, %arg2, %c0_i32 : i32, i32, i32
  }
  func.func @transform_1(%arg0: i32, %arg1: i32, %arg2: i32) -> (i32, i32) {
    %c0_i32 = arith.constant 0 : i32
    %c0_i32_0 = arith.constant 0 : i32
    %c0_i32_1 = arith.constant 0 : i32
    return %c0_i32, %c0_i32_0 : i32, i32
  }
  func.func @transform_2(%arg0: i32, %arg1: i32, %arg2: i32) -> (i32, i32, i32) {
    %c0_i32 = arith.constant 0 : i32
    return %arg0, %arg1, %arg2 : i32, i32, i32
  }
  func.func @transform_3(%arg0: i32, %arg1: i32, %arg2: i32) -> (i32, i32, i32) {
    %c0_i32 = arith.constant 0 : i32
    %c0_i32_0 = arith.constant 0 : i32
    return %arg0, %arg1, %c0_i32 : i32, i32, i32
  }
}

</mosaic_0001>

<bundles_post_ra>
// kernel: tpu_custom_call.1
= control target key start
LH: loop header
LB: loop body
LE: loop exit
PB: predicated region body
PF: predicated region fallthrough
CT: control target
= control target key end

     0   :  { %s1138_s0 = inlined_call_operand.hbm [shape: f32[2,8,16], index: 0, kind: input, shape index: {}]   ;;  %s1139_s1 = inlined_call_operand.hbm [shape: f32[16,128], index: 1, kind: input, shape index: {}]   ;;  %s1140_s2 = inlined_call_operand.hbm [shape: f32[2,8,8], index: 2, kind: input, shape index: {}]   ;;  %s1141_s3 = inlined_call_operand.hbm [shape: f32[2,8,128], index: 3, kind: output, shape index: {}]  }
   0x1   :  { %1147 = sst [smem:[#allocation13_spill]] %s1138_s0 }
   0x2   :  { %8 = vsyncpa [#allocation3], 0 }
   0x3   :  { %10 = vsyncpa [#allocation3 + $0x1], 0 }
   0x4   :  { %11 = vsyncpa [#allocation6], 0 }
   0x5   :  { %12 = vsyncpa [#allocation4], 0 }
   0x6   :  { %14 = vsyncpa [#allocation4 + $0x1], 0  ;;  %s877_s12 = smov 0   ;;  %s879_s13 = smov 0  }
   0x7   :  { %s881_s14 = smov 0   ;;  %s883_s15 = smov 0  }
   0x8   :  { %s885_s16 = smov 0   ;;  %s887_s17 = smov 0  }
   0x9 LB: > { %s39_s18 = sadd.s32 1, %s842_s16  ;;  %s48_s19 = sadd.s32 1, %s834_s14  ;;  %s846_s17 = sphi %s887_s17, %s20_s17   ;;  %s842_s16 = sphi %s885_s16, %s1167_s16   ;;  %s838_s15 = sphi %s883_s15, %s1166_s15   ;;  %s834_s14 = sphi %s881_s14, %s1165_s14   ;;  %s830_s13 = sphi %s879_s13, %s1164_s13   ;;  %s826_s12 = sphi %s877_s12, %s1163_s12  }
   0xa   : > { %p41_p0 = scmp.ge.s32.totalorder %s39_s18, 2  ;;  %p55_p1 = scmp.ne.s32.totalorder %s834_s14, %s830_s13 }
   0xb   : > { %p56_p2 = scmp.eq.s32.totalorder %s846_s17, 0  ;;  %p611_p5 = scmp.lt.s32.totalorder %s846_s17, 2 }
   0xc   : > { %s1169_s18 = smov (%p41_p0, %s39_s18), 0  ;;  %s177_s21 = sand.u32 1, %s846_s17  }
   0xd   : > { %p57_p4 = por %p56_p2, %p55_p1  ;;  %s43_s20 = ssub.s32 %s842_s16, %s1169_s18 }
   0xe   : > { %p46_p6 = scmp.eq.s32.totalorder %s43_s20, 0  ;;  %s179_s22 = sand.u32 1, %s834_s14  }
   0xf   : > { %s551_s23 = sshll.u32 %s842_s16, 7  ;;  %s927_s25 = sshll.u32 %s179_s22, 3 }
  0x10   : > { %s925_s24 = scalar_select %p46_p6, %s834_s14, %s48_s19  }
  0x11   : > { %s1148_s0 = sld [smem:[#allocation13_spill]]  ;;  %p936_p7 = pnand %p611_p5, %p57_p4 }
  0x12   : > { %s181_s30 = scalar_lea.vmem [#allocation2], %s927_s25  ;;  %s943_s5 = scalar_lea.sflag [#allocation3], %s177_s21 }
  0x13   : > { %s189_s4 = sshll.u32 %s181_s30, 4  ;;  %p670_p9 = pneg %p936_p7  ;;  %s941_s4 = int_to_ptr.vmem [resolvable:$true] %s189_s4 }
  0x17   : > { %s934_s28 = scalar_lea.hbm %s1148_s0, %s551_s23  ;;  %s673_s9 = scalar_lea.hbm %s1148_s0, 256 }
  0x18   : > { %s668_s6 = scalar_lea.hbm %s934_s28, 128  ;;  %p674_p12 = scmp.lt.u32.totalorder %s934_s28, %s1148_s0 }
  0x19   : > { %p669_p8 = scmp.ne.s32.totalorder %s934_s28, %s668_s6  ;;  %p675_p13 = scmp.lt.u32.totalorder %s673_s9, %s668_s6 }
  0x1a   : > { %p677_p2 = scmp.lt.u32.totalorder %s668_s6, %s934_s28 }
  0x1b   : > { %p671_p10 = pnand %p670_p9, %p669_p8  ;;  %p676_p0 = por %p675_p13, %p674_p12 }
  0x1d   : > { %p672_p11 = pneg %p671_p10  ;;  %p678_p4 = por %p677_p2, %p676_p0 }
  0x1f   : > { %p679_p5 = pnand %p678_p4, %p672_p11 }
  0x21   : > { %682 = shalt.err (!%p679_p5)
}
  0x22   : > { %s683_s19 = scalar_lea.vmem %s941_s4, 128  ;;  %s848_s20 = smov [#allocation2]  }
  0x23   : > { %p684_p6 = scmp.ne.s32.totalorder %s941_s4, %s683_s19  ;;  %s688_s21 = sshll.u32 %s848_s20, 4  ;;  %s689_s21 = int_to_ptr.vmem [resolvable:$false] %s688_s21 }
  0x24   : > { %s690_s22 = scalar_lea.vmem %s689_s21, 256  ;;  %p691_p3 = scmp.lt.s32.totalorder %s941_s4, %s689_s21 }
  0x25   : > { %p686_p8 = pnand %p684_p6, %p670_p9  ;;  %p692_p12 = scmp.lt.s32.totalorder %s690_s22, %s683_s19 }
  0x27   : > { %p687_p10 = pneg %p686_p8  ;;  %p693_p13 = por %p692_p12, %p691_p3 }
  0x29   : > { %p694_p0 = pnand %p693_p13, %p687_p10 }
  0x2b   : > { %697 = shalt.err (!%p694_p0)
}
  0x2c   : > { %602 = dma.hbm_to_vmem [thread:$0]  (!%p936_p7), %s934_s28, 128, %s941_s4, %s943_s5  }
  0x2d   : > { %s972_s26 = sadd.s32 4294967295, %s846_s17   ;;  %s546_s27 = sadd.s32 4294967294, %s846_s17  }
  0x2e   : > { %p61_p3 = scmp.ne.s32.totalorder %s830_s13, %s826_s12  ;;  %p1142_p11 = scmp.eq.s32.totalorder %s972_s26, 0 }
  0x2f   : > { %p138_p2 = scmp.eq.s32.totalorder %s972_s26, 1  ;;  %p144_p4 = scmp.eq.s32.totalorder %s546_s27, 1 }
  0x30   : > { %p547_p5 = scmp.ge.s32.totalorder %s846_s17, 1  ;;  %p982_p6 = por %p1142_p11, %p61_p3 }
  0x31   : > { %p989_p8 = por %p138_p2, %p55_p1  ;;  %p993_p10 = por %p144_p4, %p61_p3 }
  0x32   : > { %s1150_s30 = scalar_select %p982_p6, 1, 0 }
  0x33   : > { %s1151_s28 = scalar_select %p989_p8, 1, 0 }
  0x34   : > { %s1152_s4 = scalar_select %p993_p10, 1, 0 }
  0x35   : > { %p151_p12 = scmp.lt.s32.totalorder %s846_s17, 3  ;;  %s849_s7 = smov [#allocation5]  }
  0x36   : > { %s163_s8 = sshll.u32 %s849_s7, 4  ;;  %s1007_s11 = scalar_lea.hbm %s1140_s2, %s551_s23  ;;  %s1009_s8 = int_to_ptr.vmem [resolvable:$true] %s163_s8 }
  0x37   : > { %p998_p13 = pnand %p547_p5, %p151_p12  ;;  %s200_s19 = scalar_lea.vmem [#allocation7], %s927_s25 }
  0x38   : > { %s209_s20 = sshll.u32 %s200_s19, 4  ;;  %s698_s22 = scalar_lea.hbm %s1007_s11, 128  ;;  %s210_s20 = int_to_ptr.vmem [resolvable:$true] %s209_s20 }
  0x39   : > { %s1153_s6 = scalar_select %p998_p13, 1, 0 }
  0x3a   : > { %p595_p1 = pneg %p998_p13  ;;  %p699_p3 = scmp.ne.s32.totalorder %s1007_s11, %s698_s22 }
  0x3b   : > { %s703_s7 = scalar_lea.hbm %s1140_s2, 256  ;;  %p704_p5 = scmp.lt.u32.totalorder %s1007_s11, %s1140_s2 }
  0x3c   : > { %p1016_p0 = pnand %p595_p1, %p1142_p11  ;;  %p701_p2 = pnand %p699_p3, %p670_p9 }
  0x3d   : > { %p705_p12 = scmp.lt.u32.totalorder %s703_s7, %s698_s22  ;;  %p707_p11 = scmp.lt.u32.totalorder %s698_s22, %s1007_s11 }
  0x3e   : > { %s1154_s21 = scalar_select %p1016_p0, 1, 0 }
  0x3f   : > { %p702_p4 = pneg %p701_p2  ;;  %p706_p1 = por %p705_p12, %p704_p5 }
  0x41   : > { %p708_p10 = por %p707_p11, %p706_p1 }
  0x43   : > { %p709_p8 = pnand %p708_p10, %p702_p4 }
  0x45   : > { %712 = shalt.err (!%p709_p8)
}
  0x46   : > { %s713_s25 = scalar_lea.vmem %s210_s20, 128  ;;  %s850_s19 = smov [#allocation7]  }
  0x47   : > { %p714_p6 = scmp.ne.s32.totalorder %s210_s20, %s713_s25  ;;  %s718_s23 = sshll.u32 %s850_s19, 4  ;;  %s719_s23 = int_to_ptr.vmem [resolvable:$false] %s718_s23 }
  0x48   : > { %s720_s27 = scalar_lea.vmem %s719_s23, 256  ;;  %p721_p13 = scmp.lt.s32.totalorder %s210_s20, %s719_s23 }
  0x49   : > { %p716_p3 = pnand %p714_p6, %p670_p9  ;;  %p722_p0 = scmp.lt.s32.totalorder %s720_s27, %s713_s25 }
  0x4b   : > { %p717_p2 = pneg %p716_p3  ;;  %p723_p5 = por %p722_p0, %p721_p13 }
  0x4d   : > { %p724_p12 = pnand %p723_p5, %p717_p2 }
  0x4f   : > { %727 = shalt.err (!%p724_p12)
}
  0x50   : > { %605 = dma.hbm_to_vmem [thread:$0]  (!%p936_p7), %s1007_s11, 128, %s210_s20, %s943_s5  }
  0x51   : > { %s728_s9 = scalar_lea.hbm %s1139_s1, 256  ;;  %p1155_p11 = scmp.ne.s32.totalorder %s1154_s21, 0 }
  0x52   : > { %p729_p9 = scmp.ne.s32.totalorder %s1139_s1, %s728_s9  ;;  %p735_p13 = scmp.lt.u32.totalorder %s728_s9, %s1139_s1 }
  0x53   : > { %p730_p6 = pneg %p1155_p11 }
  0x55   : > { %p731_p8 = pnand %p730_p6, %p729_p9 }
  0x57   : > { %p732_p10 = pneg %p731_p8 }
  0x59   : > { %p737_p0 = pnand %p735_p13, %p732_p10 }
  0x5b   : > { %740 = shalt.err (!%p737_p0)
}
  0x5c   : > { %s741_s29 = scalar_lea.vmem %s1009_s8, 256  ;;  %p749_p3 = scmp.lt.s32.totalorder %s1009_s8, %s1009_s8 }
  0x5d   : > { %p742_p7 = scmp.ne.s32.totalorder %s1009_s8, %s741_s29  ;;  %p750_p2 = scmp.lt.s32.totalorder %s741_s29, %s741_s29 }
  0x5f   : > { %p744_p4 = pnand %p742_p7, %p730_p6  ;;  %p751_p5 = por %p750_p2, %p749_p3 }
  0x61   : > { %p745_p1 = pneg %p744_p4 }
  0x63   : > { %p752_p12 = pnand %p751_p5, %p745_p1 }
  0x65   : > { %755 = shalt.err (!%p752_p12)
}
  0x66   : > { %s851_s0 = smov 128   ;;  %s852_s5 = smov 8  }
  0x67   : > { %598 = dma.hbm_to_vmem [thread:$0]  (!%p1155_p11), %s1139_s1, 256, %s1009_s8, [#allocation6], %s851_s0, %s851_s0, %s852_s5  }
  0x68   : > { %p1156_p9 = scmp.ne.s32.totalorder %s1153_s6, 0 }
  0x69   : > { %s220_s23 = sand.u32 (!%p1156_p9), 1, %s972_s26   ;;  %s222_s27 = sand.u32 (!%p1156_p9), 1, %s830_s13  }
  0x6a   : > { %218 = sbr.rel (%p1156_p9) target bundleno = 562 (0x232), region = 32  ;;  %s1067_s22 = sshll.u32 (!%p1156_p9), %s222_s27, 3 }
  0x6b   : > { %s221_s7 = scalar_lea.sflag (!%p1156_p9), [#allocation3], %s220_s23  ;;  %s224_s9 = scalar_lea.vmem (!%p1156_p9), [#allocation2], %s1067_s22 }
  0x6c   : > { %p1157_p6 = scmp.ne.s32.totalorder (!%p1156_p9), %s1150_s30, 0 }
  0x71   : > { %809 = dma.done.wait (%p1157_p6), %s221_s7, 128  }
  0x72   : > { %811 = vsyncadd (%p1157_p6), %s221_s7, 4294967168  ;;  %p1158_p11 = scmp.eq.s32.totalorder %s972_s26, 0 }
  0x74   : > { %813 = dma.done.wait (%p1158_p11), [#allocation6], 256   ;;  %p1159_p8 = pmov %p1158_p11 }
  0x75   : > { %s237_s6 = scalar_lea.vmem [#allocation7], %s1067_s22 }
  0x76   : > { %815 = vsyncadd (%p1159_p8), [#allocation6], 4294967040 }
  0x77   : > { %817 = dma.done.wait (%p1157_p6), %s221_s7, 128  }
  0x78   : > { %819 = vsyncadd (%p1157_p6), %s221_s7, 4294967168  ;;  %v853_v0 = vmov 0.0   ;;  %vm854_vm0 = vmmov 0   ;;  %v855_v1 = vmov 0.0|0.0   ;;  %vm267_vm1 = vcmask 64512   ;;  %v266_v2 = vld [vmem:[%s224_s9] sm:$0xff] }
  0x79   : > { %570 = vmatprep.subr.mxu0 %v853_v0  ;;  %572 = vmatprep.mubr.msk.f32.mxu0 %vm854_vm0, %v853_v0  ;;  %v265_v3 = vld [vmem:[%s237_s6] sm:$0xff]  ;;  %v341_v4 = vld [vmem:[#allocation5] sm:$0xff]  ;;  %v342_v5 = vld [vmem:[#allocation5 + $0x8] sm:$0xff]  ;;  %vm343_vm2 = vcmask 130048   ;;  %s264_s26 = scalar_lea.vmem [#allocation8], %s1067_s22  ;;  %s562_s8 = sshll.u32 %s838_s15, 7 }
  0x7a   : > { %582 = vmatprep.subr.bf16.mxu1 %v855_v1  ;;  %579 = vmatprep.mubr.msk.f32.mxu1 %vm854_vm0, %v853_v0  ;;  %v583_v6 = vpack.c.bf16 %v342_v5, %v341_v4  ;;  %s433_s30 = sshll.u32 %s264_s26, 4  ;;  %s1090_s25 = scalar_lea.hbm %s1141_s3, %s562_s8  ;;  %s1085_s30 = int_to_ptr.vmem [resolvable:$true] %s433_s30 }
  0x7b   : > { %571 = vmatpush3.msra.mxu0 %v266_v2  ;;  %s419_s19 = scalar_lea.sflag [#allocation4], %s222_s27  ;;  %s756_s29 = scalar_lea.vmem %s1085_s30, 128 }
  0x7c   : > { %573 = vmatmul.mubr.msk.f32.vlgmr.msra.gmra.mrb[0].mxu0 %vm267_vm1, %v265_v3  ;;  %584 = vmatpush3.bf16.msra.mxu1 %v583_v6  ;;  %p757_p10 = scmp.ne.s32.totalorder %s1085_s30, %s756_s29  ;;  %p1160_p13 = scmp.ne.s32.totalorder %s1151_s28, 0 }
  0x7d   : > { %s856_s15 = smov [#allocation8]  }
  0x7e   : > { %p758_p0 = pnand %p757_p10, %p1160_p13  ;;  %s760_s0 = sshll.u32 %s856_s15, 4  ;;  %s761_s0 = int_to_ptr.vmem [resolvable:$false] %s760_s0 }
  0x7f   : > { %s762_s5 = scalar_lea.vmem %s761_s0, 256  ;;  %p763_p4 = scmp.lt.s32.totalorder %s1085_s30, %s761_s0 }
  0x80   : > { %p759_p7 = pneg %p758_p0  ;;  %p764_p1 = scmp.lt.s32.totalorder %s762_s5, %s756_s29 }
  0x82   : > { %p765_p3 = por %p764_p1, %p763_p4 }
  0x84   : > { %p766_p2 = pnand %p765_p3, %p759_p7 }
 0x14f   : > { %v337_v7 = vpop.f32.mrb[0].mxu0 }
 0x150   : > { %v574_v8 = vpop.f32.mrb[1].mxu0  ;;  %580 = vmatmul.mubr.msk.f32.vlgmr.msra.gmra.mrb[0].mxu1 %vm343_vm2, %v337_v7 }
 0x223   : > { %v413_v9 = vpop.f32.mrb[0].mxu1 }
 0x224   : > { %417 = vst [vmem:[%s264_s26] sm:$0xff] %v413_v9  ;;  %v581_v10 = vpop.f32.mrb[1].mxu1 }
 0x225   : > { %769 = shalt.err (!%p766_p2)
}
 0x226   : > { %s770_s11 = scalar_lea.hbm %s1090_s25, 128  ;;  %s774_s27 = scalar_lea.hbm %s1141_s3, 256 }
 0x227   : > { %p771_p5 = scmp.ne.s32.totalorder %s1090_s25, %s770_s11  ;;  %p775_p6 = scmp.lt.u32.totalorder %s1090_s25, %s1141_s3 }
 0x228   : > { %p776_p11 = scmp.lt.u32.totalorder %s774_s27, %s770_s11  ;;  %p778_p10 = scmp.lt.u32.totalorder %s770_s11, %s1090_s25 }
 0x229   : > { %p772_p12 = pnand %p771_p5, %p1160_p13 }
 0x22a   : > { %p777_p8 = por %p776_p11, %p775_p6 }
 0x22b   : > { %p773_p9 = pneg %p772_p12 }
 0x22c   : > { %p779_p0 = por %p778_p10, %p777_p8 }
 0x22e   : > { %p780_p7 = pnand %p779_p0, %p773_p9 }
 0x230   : > { %783 = shalt.err (!%p780_p7)
}
 0x231   : > { %593 = dma.vmem_to_hbm [thread:$0]  (%p1160_p13), %s1085_s30, 128, %s1090_s25, %s419_s19  }
 0x232 PF: > { %s445_s9 = sand.u32 1, %s826_s12   ;;  %p1161_p4 = scmp.ne.s32.totalorder %s1152_s4, 0 }
 0x233   : > { %p1162_p1 = scmp.ge.s32.totalorder %s846_s17, 2  ;;  %s446_s6 = scalar_lea.sflag [#allocation4], %s445_s9 }
 0x235   : > { %p607_p3 = pnand %p1162_p1, %p1161_p4 }
 0x237   : > { %821 = dma.done.wait (!%p607_p3), %s446_s6, 128  }
 0x238   : > { %823 = vsyncadd (!%p607_p3), %s446_s6, 4294967168  ;;  %s20_s17 = sadd.s32 1, %s846_s17   ;;  %s1163_s12 = smov %s830_s13 }
 0x239   : > { %p17_p2 = scmp.ge.s32.totalorder %s20_s17, 4   ;;  %s1164_s13 = smov %s834_s14 }
 0x23a   : > { %s1165_s14 = smov %s925_s24  ;;  %s1166_s15 = smov %s842_s16 }
 0x23b   : > { %s1167_s16 = smov %s1169_s18  ;;  %19 = sbr.rel (!%p17_p2) target bundleno = 9 (0x9), region = 92 }
 0x242   :  { %451 = vsyncpa [#allocation3], 1 }
 0x243   :  { %453 = vsyncpa [#allocation3 + $0x1], 1 }
 0x244   :  { %454 = vsyncpa [#allocation6], 1 }
 0x245   :  { %455 = vsyncpa [#allocation4], 1 }
 0x246   :  { %457 = vsyncpa [#allocation4 + $0x1], 1 }

</bundles_post_ra>
